<compile_context>
chip_gen: v7x
topology: tpu7x:2x2x1
jax: 0.10.0
libtpu: 0.0.40
codegen_flags: <defaults>
</compile_context>

<pallas_src>
import functools

import jax
import jax.numpy as jnp
from jax.experimental import pallas as pl
from jax.experimental.pallas import tpu as pltpu

PAD = 0          # padding_idx used by dl4mt.Generator
_NEG = -1.0e30   # finite mask value for the stats pass (avoids -inf - -inf NaN)


def _round_up(x, m):
    return ((x + m - 1) // m) * m


# ---------------------------------------------------------------------------
# Kernel 1 (stats): cached tanh activation + per-lane online logsumexp over
# vocab tiles.  Cross-lane XLU reduce only at the last vocab step.
# ---------------------------------------------------------------------------
def _stats_kernel(h_ref, w1_ref, b1_ref, w2_ref, bias_ref,
                  x_ref, lse_ref, m_sc, l_sc, *, n_lane_chunks):
    j = pl.program_id(1)

    @pl.when(j == 0)
    def _():
        # hidden -> d_word_vec, tanh; computed once per row tile and cached
        # directly in the (VMEM-resident) bf16 output block.
        x = jnp.dot(h_ref[...].astype(jnp.bfloat16), w1_ref[...],
                    preferred_element_type=jnp.float32)
        x = jnp.tanh(x + b1_ref[...])
        x_ref[...] = x.astype(x_ref.dtype)
        m_sc[...] = jnp.full(m_sc.shape, _NEG, dtype=m_sc.dtype)
        l_sc[...] = jnp.zeros(l_sc.shape, dtype=l_sc.dtype)

    # logits for this vocab tile (bf16 x bf16 -> f32 accumulate on MXU),
    # plus additive PAD / vocab-padding mask (0 or -1e30).
    logits = jnp.dot(x_ref[...], w2_ref[...], preferred_element_type=jnp.float32)
    logits = logits + bias_ref[...]

    # Per-lane online max / sum-exp: lane-aligned 128-wide slices -> VPU/EUP
    # only inside the vocab loop (no per-tile XLU reduction).
    t_max = logits[:, 0:128]
    for c in range(1, n_lane_chunks):
        t_max = jnp.maximum(t_max, logits[:, c * 128:(c + 1) * 128])

    m_prev = m_sc[...]
    m_new = jnp.maximum(m_prev, t_max)

    s = jnp.exp(logits[:, 0:128] - m_new)
    for c in range(1, n_lane_chunks):
        s = s + jnp.exp(logits[:, c * 128:(c + 1) * 128] - m_new)

    l_sc[...] = jnp.exp(m_prev - m_new) * l_sc[...] + s
    m_sc[...] = m_new

    @pl.when(j == pl.num_programs(1) - 1)
    def _():
        # Single cross-lane reduction per row tile: fold the 128 per-lane
        # accumulators into one logsumexp per row.
        m_row = jnp.max(m_sc[...], axis=-1, keepdims=True)
        l_row = jnp.sum(l_sc[...] * jnp.exp(m_sc[...] - m_row),
                        axis=-1, keepdims=True)
        lse_ref[...] = m_row + jnp.log(l_row)


# ---------------------------------------------------------------------------
# Kernel 2 (emit): recompute logits per (row, vocab) tile from the cached bf16
# activation, normalize, store once (lane-dense [tm, tn] tiles).
# ---------------------------------------------------------------------------
def _emit_kernel(x_ref, lse_ref, w2_ref, bias_ref, o_ref, *, logprob):
    logits = jnp.dot(x_ref[...], w2_ref[...], preferred_element_type=jnp.float32)
    z = logits + bias_ref[...] - lse_ref[...]       # log_softmax (-inf at PAD)
    if logprob:
        o_ref[...] = z.astype(o_ref.dtype)
    else:
        o_ref[...] = jnp.exp(z).astype(o_ref.dtype)  # softmax (EUP exp)


# ---------------------------------------------------------------------------
# One-time parameter preparation (hoisted out of the per-call path).
# ---------------------------------------------------------------------------
def prepare_word_predictor_params(w1, b1, w2, *, tn_max=2048):
    """Cast weights to bf16, pad vocab to a multiple of 128, build mask rows.

    Call once at init; the returned dict is reused by every word_predictor call
    (avoids re-reading/re-writing the ~d_word_vec x n_vocab weight every step).
    """
    d_model, d_word_vec = w1.shape
    n_vocab = w2.shape[1]
    n_vocab_p = _round_up(n_vocab, 128)

    # Largest multiple of 128 <= tn_max that divides the padded vocab
    # (always exists: 128), so vocab tiles divide exactly -> no extra padding.
    tn = 128
    start = max(128, (min(tn_max, n_vocab_p) // 128) * 128)
    for cand in range(start, 127, -128):
        if n_vocab_p % cand == 0:
            tn = cand
            break

    w2_b = w2.astype(jnp.bfloat16)
    if n_vocab_p != n_vocab:
        w2_b = jnp.pad(w2_b, ((0, 0), (0, n_vocab_p - n_vocab)))

    cols = jnp.arange(n_vocab_p)
    masked = (cols == PAD) | (cols >= n_vocab)
    stats_bias = jnp.where(masked, _NEG, 0.0).astype(jnp.float32).reshape(1, n_vocab_p)
    emit_bias = jnp.where(masked, -jnp.inf, 0.0).astype(jnp.float32).reshape(1, n_vocab_p)

    return dict(
        w1=w1.astype(jnp.bfloat16),
        b1=b1.reshape(1, d_word_vec).astype(jnp.float32),
        w2=w2_b,
        stats_bias=stats_bias,
        emit_bias=emit_bias,
        tn=tn,
        n_vocab=n_vocab,
        d_model=d_model,
        d_word_vec=d_word_vec,
    )


# ---------------------------------------------------------------------------
# Forward pass.
# ---------------------------------------------------------------------------
def word_predictor(hiddens, params, *, logprob=True, tm=512,
                   out_dtype=jnp.bfloat16):
    """hiddens: [batch, seq, d_model] float32; params from
    prepare_word_predictor_params().  out_dtype=jnp.float32 for full-precision
    log-probs."""
    batch, seq, d_model = hiddens.shape
    assert d_model == params["d_model"]
    d_word_vec = params["d_word_vec"]
    n_vocab = params["n_vocab"]
    tn = params["tn"]
    n_vocab_p = params["w2"].shape[1]
    n_rows = batch * seq

    # Row tile: multiple of 16 (bf16 sublane packing), adapted to small inputs.
    tm = max(16, (min(tm, _round_up(n_rows, 16)) // 16) * 16)
    n_rows_p = _round_up(n_rows, tm)
    n_row_t = n_rows_p // tm
    n_voc_t = n_vocab_p // tn

    h2d = hiddens.reshape(n_rows, d_model)
    if n_rows_p != n_rows:
        h2d = jnp.pad(h2d, ((0, n_rows_p - n_rows), (0, 0)))

    # ---- pass 1: cached bf16 activation + per-row logsumexp ------------------
    stats = functools.partial(_stats_kernel, n_lane_chunks=tn // 128)
    x_act, lse = pl.pallas_call(
        stats,
        out_shape=(jax.ShapeDtypeStruct((n_rows_p, d_word_vec), jnp.bfloat16),
                   jax.ShapeDtypeStruct((n_rows_p, 1), jnp.float32)),
        grid_spec=pltpu.PrefetchScalarGridSpec(
            num_scalar_prefetch=0,
            grid=(n_row_t, n_voc_t),              # vocab axis last (reduction)
            in_specs=[
                pl.BlockSpec((tm, d_model), lambda i, j: (i, 0)),
                pl.BlockSpec((d_model, d_word_vec), lambda i, j: (0, 0)),
                pl.BlockSpec((1, d_word_vec), lambda i, j: (0, 0)),
                pl.BlockSpec((d_word_vec, tn), lambda i, j: (0, j)),
                pl.BlockSpec((1, tn), lambda i, j: (0, j)),
            ],
            out_specs=[
                pl.BlockSpec((tm, d_word_vec), lambda i, j: (i, 0)),
                pl.BlockSpec((tm, 1), lambda i, j: (i, 0)),
            ],
            scratch_shapes=[
                pltpu.VMEM((tm, 128), jnp.float32),   # per-lane running max
                pltpu.VMEM((tm, 128), jnp.float32),   # per-lane running sum-exp
            ]),
        compiler_params=pltpu.CompilerParams(
            dimension_semantics=("parallel", "arbitrary")),
    )(h2d, params["w1"], params["b1"], params["w2"], params["stats_bias"])

    # ---- pass 2: normalized output, vocab-outer grid so each w2 tile is ------
    # ---- DMA'd from HBM exactly once; lane-dense [tm, tn] stores. ------------
    emit = functools.partial(_emit_kernel, logprob=logprob)
    out2d = pl.pallas_call(
        emit,
        out_shape=jax.ShapeDtypeStruct((n_rows_p, n_vocab_p), out_dtype),
        grid_spec=pltpu.PrefetchScalarGridSpec(
            num_scalar_prefetch=0,
            grid=(n_voc_t, n_row_t),              # vocab OUTER, rows INNER
            in_specs=[
                pl.BlockSpec((tm, d_word_vec), lambda j, i: (i, 0)),
                pl.BlockSpec((tm, 1), lambda j, i: (i, 0)),
                pl.BlockSpec((d_word_vec, tn), lambda j, i: (0, j)),
                pl.BlockSpec((1, tn), lambda j, i: (0, j)),
            ],
            out_specs=pl.BlockSpec((tm, tn), lambda j, i: (i, j)),
        ),
        compiler_params=pltpu.CompilerParams(
            dimension_semantics=("parallel", "parallel")),
    )(x_act, lse, params["w2"], params["emit_bias"])

    # Slice only if padding was actually added (otherwise zero-copy).
    if n_rows_p != n_rows or n_vocab_p != n_vocab:
        out2d = out2d[:n_rows, :n_vocab]
    return out2d.reshape(batch, seq, n_vocab)


# ---------------------------------------------------------------------------
# Reference (same bf16 matmul inputs / f32 accumulation as the kernel path).
# ---------------------------------------------------------------------------
def _reference(hiddens, w1, b1, w2, logprob=True):
    h = hiddens.astype(jnp.bfloat16)
    x = jnp.einsum("bsd,de->bse", h, w1.astype(jnp.bfloat16),
                   preferred_element_type=jnp.float32)
    x = jnp.tanh(x + b1).astype(jnp.bfloat16)
    logits = jnp.einsum("bse,ev->bsv", x, w2.astype(jnp.bfloat16),
                        preferred_element_type=jnp.float32)
    logits = logits.at[..., PAD].set(-jnp.inf)
    if logprob:
        return jax.nn.log_softmax(logits, axis=-1)
    return jax.nn.softmax(logits, axis=-1)


if __name__ == "__main__":
    # Small shapes consistent with the module's forward.
    batch, seq = 2, 8
    d_model, d_word_vec, n_tgt_vocab = 32, 32, 128

    key = jax.random.PRNGKey(0)
    k_h, k_w1, k_b1, k_w2 = jax.random.split(key, 4)

    hiddens = jax.random.normal(k_h, (batch, seq, d_model), dtype=jnp.float32)
    # Deterministic parameter init (synthetic; no checkpoint load).
    w1 = jax.random.normal(k_w1, (d_model, d_word_vec), dtype=jnp.float32) * 0.1
    b1 = jax.random.normal(k_b1, (d_word_vec,), dtype=jnp.float32) * 0.1
    w2 = jax.random.normal(k_w2, (d_word_vec, n_tgt_vocab), dtype=jnp.float32) * 0.1

    # Weight prep once (hoisted out of the per-call path).
    params = prepare_word_predictor_params(w1, b1, w2)

    # log-softmax path, full-precision output.
    out = word_predictor(hiddens, params, logprob=True, out_dtype=jnp.float32)
    out = jax.block_until_ready(out)
    ref = _reference(hiddens, w1, b1, w2, logprob=True)
    assert out.shape == (batch, seq, n_tgt_vocab)
    assert jnp.allclose(out[..., 1:], ref[..., 1:], atol=1e-2, rtol=1e-2)
    assert bool(jnp.all(jnp.isneginf(out[..., PAD])))

    # softmax path with the default bf16 output (halved HBM writeback).
    out_sm = word_predictor(hiddens, params, logprob=False)
    out_sm = jax.block_until_ready(out_sm)
    ref_sm = _reference(hiddens, w1, b1, w2, logprob=False)
    assert out_sm.dtype == jnp.bfloat16
    assert jnp.allclose(out_sm[..., 1:].astype(jnp.float32), ref_sm[..., 1:],
                        atol=1e-2, rtol=5e-2)
    assert bool(jnp.all(out_sm[..., PAD] == 0.0))

    print("KERNEL_OK")
</pallas_src>

<mosaic_0001>
module attributes {stable_mosaic.version = 11 : i64} {
  func.func @_stats_kernel(%arg0: i32, %arg1: i32, %arg2: memref<16x32xf32, #tpu.memory_space<vmem>>, %arg3: memref<32x32xbf16, #tpu.memory_space<vmem>>, %arg4: memref<1x32xf32, #tpu.memory_space<vmem>>, %arg5: memref<32x128xbf16, #tpu.memory_space<vmem>>, %arg6: memref<1x128xf32, #tpu.memory_space<vmem>>, %arg7: memref<16x32xbf16, #tpu.memory_space<vmem>>, %arg8: memref<16x1xf32, #tpu.memory_space<vmem>>, %arg9: memref<16x128xf32, #tpu.memory_space<vmem>>, %arg10: memref<16x128xf32, #tpu.memory_space<vmem>>) attributes {dimension_semantics = [#tpu.dimension_semantics<parallel>, #tpu.dimension_semantics<arbitrary>], iteration_bounds = array<i64: 1, 1>, scalar_prefetch = 0 : i64, scratch_operands = 2 : i64, tpu.core_type = #tpu.core_type<tc>, window_params = [{transform_indices = @transform_0, window_bounds = array<i64: 16, 32>}, {pipeline_mode = #tpu.pipeline_mode<synchronous>, transform_indices = @transform_1, window_bounds = array<i64: 32, 32>}, {pipeline_mode = #tpu.pipeline_mode<synchronous>, transform_indices = @transform_2, window_bounds = array<i64: 1, 32>}, {transform_indices = @transform_3, window_bounds = array<i64: 32, 128>}, {transform_indices = @transform_4, window_bounds = array<i64: 1, 128>}, {transform_indices = @transform_5, window_bounds = array<i64: 16, 32>}, {transform_indices = @transform_6, window_bounds = array<i64: 16, 1>}]} {
    %c0_i32 = arith.constant 0 : i32
    %0 = arith.cmpi eq, %arg1, %c0_i32 : i32
    %1 = arith.extui %0 : i1 to i32
    %c0_i32_0 = arith.constant 0 : i32
    %2 = arith.cmpi ne, %1, %c0_i32_0 : i32
    scf.if %2 {
      %c0_16 = arith.constant 0 : index
      %c0_17 = arith.constant 0 : index
      %23 = vector.load %arg2[%c0_16, %c0_17] : memref<16x32xf32, #tpu.memory_space<vmem>>, vector<16x32xf32>
      %24 = arith.truncf %23 : vector<16x32xf32> to vector<16x32xbf16>
      %c0_18 = arith.constant 0 : index
      %c0_19 = arith.constant 0 : index
      %25 = vector.load %arg3[%c0_18, %c0_19] : memref<32x32xbf16, #tpu.memory_space<vmem>>, vector<32x32xbf16>
      %cst_20 = arith.constant dense<0.000000e+00> : vector<16x32xf32>
      %26 = tpu.matmul %24, %25, %cst_20 {dimension_numbers = #tpu.dot_dimension_numbers<[1], [0], [0], [1], [0, 0, 1, 1], [], []>} : vector<16x32xbf16>, vector<32x32xbf16>, vector<16x32xf32> -> vector<16x32xf32>
      %c0_21 = arith.constant 0 : index
      %c0_22 = arith.constant 0 : index
      %27 = vector.load %arg4[%c0_21, %c0_22] : memref<1x32xf32, #tpu.memory_space<vmem>>, vector<1x32xf32>
      %28 = vector.broadcast %27 : vector<1x32xf32> to vector<16x32xf32>
      %29 = arith.addf %26, %28 : vector<16x32xf32>
      %30 = math.tanh %29 : vector<16x32xf32>
      %31 = arith.truncf %30 : vector<16x32xf32> to vector<16x32xbf16>
      %c0_23 = arith.constant 0 : index
      %c0_24 = arith.constant 0 : index
      %32 = vector.load %arg7[%c0_23, %c0_24] : memref<16x32xbf16, #tpu.memory_space<vmem>>, vector<16x32xbf16>
      tpu.vector_store %arg7[%c0_23, %c0_24], %31 {strides = array<i32>} : memref<16x32xbf16, #tpu.memory_space<vmem>>, vector<16x32xbf16>,
      %cst_25 = arith.constant -1.000000e+30 : f32
      %33 = vector.broadcast %cst_25 : f32 to vector<16x128xf32>
      %c0_26 = arith.constant 0 : index
      %c0_27 = arith.constant 0 : index
      %34 = vector.load %arg9[%c0_26, %c0_27] : memref<16x128xf32, #tpu.memory_space<vmem>>, vector<16x128xf32>
      tpu.vector_store %arg9[%c0_26, %c0_27], %33 {strides = array<i32>} : memref<16x128xf32, #tpu.memory_space<vmem>>, vector<16x128xf32>,
      %cst_28 = arith.constant 0.000000e+00 : f32
      %35 = vector.broadcast %cst_28 : f32 to vector<16x128xf32>
      %c0_29 = arith.constant 0 : index
      %c0_30 = arith.constant 0 : index
      %36 = vector.load %arg10[%c0_29, %c0_30] : memref<16x128xf32, #tpu.memory_space<vmem>>, vector<16x128xf32>
      tpu.vector_store %arg10[%c0_29, %c0_30], %35 {strides = array<i32>} : memref<16x128xf32, #tpu.memory_space<vmem>>, vector<16x128xf32>,
    } else {
    }
    %c0 = arith.constant 0 : index
    %c0_1 = arith.constant 0 : index
    %3 = vector.load %arg7[%c0, %c0_1] : memref<16x32xbf16, #tpu.memory_space<vmem>>, vector<16x32xbf16>
    %c0_2 = arith.constant 0 : index
    %c0_3 = arith.constant 0 : index
    %4 = vector.load %arg5[%c0_2, %c0_3] : memref<32x128xbf16, #tpu.memory_space<vmem>>, vector<32x128xbf16>
    %cst = arith.constant dense<0.000000e+00> : vector<16x128xf32>
    %5 = tpu.matmul %3, %4, %cst {dimension_numbers = #tpu.dot_dimension_numbers<[1], [0], [0], [1], [0, 0, 1, 1], [], []>} : vector<16x32xbf16>, vector<32x128xbf16>, vector<16x128xf32> -> vector<16x128xf32>
    %c0_4 = arith.constant 0 : index
    %c0_5 = arith.constant 0 : index
    %6 = vector.load %arg6[%c0_4, %c0_5] : memref<1x128xf32, #tpu.memory_space<vmem>>, vector<1x128xf32>
    %7 = vector.broadcast %6 : vector<1x128xf32> to vector<16x128xf32>
    %8 = arith.addf %5, %7 : vector<16x128xf32>
    %c0_6 = arith.constant 0 : index
    %c0_7 = arith.constant 0 : index
    %9 = vector.load %arg9[%c0_6, %c0_7] : memref<16x128xf32, #tpu.memory_space<vmem>>, vector<16x128xf32>
    %10 = arith.maximumf %9, %8 : vector<16x128xf32>
    %11 = arith.subf %8, %10 : vector<16x128xf32>
    %12 = math.exp %11 : vector<16x128xf32>
    %13 = arith.subf %9, %10 : vector<16x128xf32>
    %14 = math.exp %13 : vector<16x128xf32>
    %c0_8 = arith.constant 0 : index
    %c0_9 = arith.constant 0 : index
    %15 = vector.load %arg10[%c0_8, %c0_9] : memref<16x128xf32, #tpu.memory_space<vmem>>, vector<16x128xf32>
    %16 = arith.mulf %14, %15 : vector<16x128xf32>
    %17 = arith.addf %16, %12 : vector<16x128xf32>
    %c0_10 = arith.constant 0 : index
    %c0_11 = arith.constant 0 : index
    %18 = vector.load %arg10[%c0_10, %c0_11] : memref<16x128xf32, #tpu.memory_space<vmem>>, vector<16x128xf32>
    tpu.vector_store %arg10[%c0_10, %c0_11], %17 {strides = array<i32>} : memref<16x128xf32, #tpu.memory_space<vmem>>, vector<16x128xf32>,
    %c0_12 = arith.constant 0 : index
    %c0_13 = arith.constant 0 : index
    %19 = vector.load %arg9[%c0_12, %c0_13] : memref<16x128xf32, #tpu.memory_space<vmem>>, vector<16x128xf32>
    tpu.vector_store %arg9[%c0_12, %c0_13], %10 {strides = array<i32>} : memref<16x128xf32, #tpu.memory_space<vmem>>, vector<16x128xf32>,
    %c0_i32_14 = arith.constant 0 : i32
    %20 = arith.cmpi eq, %arg1, %c0_i32_14 : i32
    %21 = arith.extui %20 : i1 to i32
    %c0_i32_15 = arith.constant 0 : i32
    %22 = arith.cmpi ne, %21, %c0_i32_15 : i32
    scf.if %22 {
      %c0_16 = arith.constant 0 : index
      %c0_17 = arith.constant 0 : index
      %23 = vector.load %arg9[%c0_16, %c0_17] : memref<16x128xf32, #tpu.memory_space<vmem>>, vector<16x128xf32>
      %cst_18 = arith.constant dense<0xFF800000> : vector<16xf32>
      %24 = vector.multi_reduction <maximumf>, %23, %cst_18 [1] : vector<16x128xf32> to vector<16xf32>
      %25 = vector.shape_cast %24 : vector<16xf32> to vector<16x1xf32>
      %c0_19 = arith.constant 0 : index
      %c0_20 = arith.constant 0 : index
      %26 = vector.load %arg10[%c0_19, %c0_20] : memref<16x128xf32, #tpu.memory_space<vmem>>, vector<16x128xf32>
      %c0_21 = arith.constant 0 : index
      %c0_22 = arith.constant 0 : index
      %27 = vector.load %arg9[%c0_21, %c0_22] : memref<16x128xf32, #tpu.memory_space<vmem>>, vector<16x128xf32>
      %28 = vector.broadcast %25 : vector<16x1xf32> to vector<16x128xf32>
      %29 = arith.subf %27, %28 : vector<16x128xf32>
      %30 = math.exp %29 : vector<16x128xf32>
      %31 = arith.mulf %26, %30 : vector<16x128xf32>
      %cst_23 = arith.constant dense<0.000000e+00> : vector<16xf32>
      %32 = vector.multi_reduction <add>, %31, %cst_23 [1] : vector<16x128xf32> to vector<16xf32>
      %33 = vector.shape_cast %32 : vector<16xf32> to vector<16x1xf32>
      %34 = math.log %33 : vector<16x1xf32>
      %35 = arith.addf %25, %34 : vector<16x1xf32>
      %c0_24 = arith.constant 0 : index
      %c0_25 = arith.constant 0 : index
      %36 = vector.load %arg8[%c0_24, %c0_25] : memref<16x1xf32, #tpu.memory_space<vmem>>, vector<16x1xf32>
      tpu.vector_store %arg8[%c0_24, %c0_25], %35 {strides = array<i32>} : memref<16x1xf32, #tpu.memory_space<vmem>>, vector<16x1xf32>,
    } else {
    }
    return
  }
  func.func @transform_0(%arg0: i32, %arg1: i32) -> (i32, i32) {
    %c0_i32 = arith.constant 0 : i32
    %c0_i32_0 = arith.constant 0 : i32
    return %arg0, %c0_i32 : i32, i32
  }
  func.func @transform_1(%arg0: i32, %arg1: i32) -> (i32, i32) {
    %c0_i32 = arith.constant 0 : i32
    %c0_i32_0 = arith.constant 0 : i32
    %c0_i32_1 = arith.constant 0 : i32
    return %c0_i32, %c0_i32_0 : i32, i32
  }
  func.func @transform_2(%arg0: i32, %arg1: i32) -> (i32, i32) {
    %c0_i32 = arith.constant 0 : i32
    %c0_i32_0 = arith.constant 0 : i32
    %c0_i32_1 = arith.constant 0 : i32
    return %c0_i32, %c0_i32_0 : i32, i32
  }
  func.func @transform_3(%arg0: i32, %arg1: i32) -> (i32, i32) {
    %c0_i32 = arith.constant 0 : i32
    %c0_i32_0 = arith.constant 0 : i32
    return %c0_i32, %arg1 : i32, i32
  }
  func.func @transform_4(%arg0: i32, %arg1: i32) -> (i32, i32) {
    %c0_i32 = arith.constant 0 : i32
    %c0_i32_0 = arith.constant 0 : i32
    return %c0_i32, %arg1 : i32, i32
  }
  func.func @transform_5(%arg0: i32, %arg1: i32) -> (i32, i32) {
    %c0_i32 = arith.constant 0 : i32
    %c0_i32_0 = arith.constant 0 : i32
    return %arg0, %c0_i32 : i32, i32
  }
  func.func @transform_6(%arg0: i32, %arg1: i32) -> (i32, i32) {
    %c0_i32 = arith.constant 0 : i32
    %c0_i32_0 = arith.constant 0 : i32
    return %arg0, %c0_i32 : i32, i32
  }
}

</mosaic_0001>

<bundles_post_ra>
// kernel: tpu_custom_call.1
= control target key start
LH: loop header
LB: loop body
LE: loop exit
PB: predicated region body
PF: predicated region fallthrough
CT: control target
= control target key end

     0   :  { %12 = vsyncpa [#allocation5], 0  ;;  %s592_s0 = inlined_call_operand.hbm [shape: f32[16,32], index: 0, kind: input, shape index: {}]   ;;  %s593_s1 = inlined_call_operand.hbm [shape: bf16[32,32], index: 1, kind: input, shape index: {}]   ;;  %s594_s2 = inlined_call_operand.vmem [shape: f32[1,32], index: 2, kind: input, shape index: {}]   ;;  %s595_s3 = inlined_call_operand.hbm [shape: bf16[32,128], index: 3, kind: input, shape index: {}]   ;;  %s596_s4 = inlined_call_operand.vmem [shape: f32[1,128], index: 4, kind: input, shape index: {}]   ;;  %s597_s5 = inlined_call_operand.hbm [shape: bf16[16,32], index: 5, kind: output, shape index: {0}]   ;;  %s598_s6 = inlined_call_operand.vmem [shape: f32[16,1], index: 6, kind: output, shape index: {1}]  }
   0x1   :  { %13 = vsyncpa [#allocation8], 0 }
   0x2   :  { %14 = vsyncpa [#allocation6], 0  ;;  %s476_s21 = smov [#allocation7]   ;;  %s382_s25 = scalar_lea.hbm %s593_s1, 256 }
   0x3   :  { %s32_s22 = sshll.u32 %s476_s21, 4  ;;  %p383_p0 = scmp.ne.s32.totalorder %s593_s1, %s382_s25  ;;  %s33_s22 = int_to_ptr.vmem [resolvable:$true] %s32_s22 }
   0x4   :  { %p386_p1 = scmp.lt.u32.totalorder %s382_s25, %s593_s1 }
   0x6   :  { %p388_p2 = pnand %p386_p1, %p383_p0 }
   0x8   :  { %391 = shalt.err (!%p388_p2)
}
   0x9   :  { %s392_s30 = scalar_lea.vmem %s33_s22, 256  ;;  %p397_p4 = scmp.lt.s32.totalorder %s33_s22, %s33_s22 }
   0xa   :  { %p393_p3 = scmp.ne.s32.totalorder %s33_s22, %s392_s30  ;;  %p398_p5 = scmp.lt.s32.totalorder %s392_s30, %s392_s30 }
   0xc   :  { %p399_p6 = por %p398_p5, %p397_p4 }
   0xe   :  { %p400_p7 = pnand %p399_p6, %p393_p3 }
  0x10   :  { %403 = shalt.err (!%p400_p7)
}
  0x11   :  { %s477_s7 = smov 64   ;;  %s478_s8 = smov 4  }
  0x12   :  { %38 = dma.hbm_to_vmem [thread:$0]  %s593_s1, 256, %s33_s22, [#allocation8], %s477_s7, %s477_s7, %s478_s8  }
  0x13   :  { %s479_s11 = smov [#allocation4]   ;;  %s404_s15 = scalar_lea.hbm %s592_s0, 256 }
  0x14   :  { %s20_s12 = sshll.u32 %s479_s11, 4  ;;  %p405_p8 = scmp.ne.s32.totalorder %s592_s0, %s404_s15  ;;  %s21_s12 = int_to_ptr.vmem [resolvable:$true] %s20_s12 }
  0x15   :  { %p408_p9 = scmp.lt.u32.totalorder %s404_s15, %s592_s0 }
  0x17   :  { %p410_p10 = pnand %p408_p9, %p405_p8 }
  0x19   :  { %413 = shalt.err (!%p410_p10)
}
  0x1a   :  { %s414_s20 = scalar_lea.vmem %s21_s12, 256  ;;  %p419_p12 = scmp.lt.s32.totalorder %s21_s12, %s21_s12 }
  0x1b   :  { %p415_p11 = scmp.ne.s32.totalorder %s21_s12, %s414_s20  ;;  %p420_p13 = scmp.lt.s32.totalorder %s414_s20, %s414_s20 }
  0x1d   :  { %p421_p0 = por %p420_p13, %p419_p12 }
  0x1f   :  { %p422_p1 = pnand %p421_p0, %p415_p11 }
  0x21   :  { %425 = shalt.err (!%p422_p1)
}
  0x22   :  { %s480_s1 = smov 128   ;;  %s481_s21 = smov 8  }
  0x23   :  { %26 = dma.hbm_to_vmem [thread:$0]  %s592_s0, 256, %s21_s12, [#allocation5], %s480_s1, %s480_s1, %s481_s21  }
  0x24   :  { %s482_s24 = smov [#allocation9]   ;;  %s426_s28 = scalar_lea.hbm %s595_s3, 256 }
  0x25   :  { %s46_s25 = sshll.u32 %s482_s24, 4  ;;  %p427_p2 = scmp.ne.s32.totalorder %s595_s3, %s426_s28  ;;  %s47_s25 = int_to_ptr.vmem [resolvable:$true] %s46_s25 }
  0x26   :  { %p430_p3 = scmp.lt.u32.totalorder %s426_s28, %s595_s3 }
  0x28   :  { %p432_p4 = pnand %p430_p3, %p427_p2 }
  0x2a   :  { %435 = shalt.err (!%p432_p4)
}
  0x2b   :  { %s436_s11 = scalar_lea.vmem %s47_s25, 256  ;;  %p441_p6 = scmp.lt.s32.totalorder %s47_s25, %s47_s25 }
  0x2c   :  { %p437_p5 = scmp.ne.s32.totalorder %s47_s25, %s436_s11  ;;  %p442_p7 = scmp.lt.s32.totalorder %s436_s11, %s436_s11 }
  0x2e   :  { %p443_p8 = por %p442_p7, %p441_p6 }
  0x30   :  { %p444_p9 = pnand %p443_p8, %p437_p5 }
  0x32   :  { %447 = shalt.err (!%p444_p9)
}
  0x33   :  { %52 = dma.hbm_to_vmem [thread:$0]  %s595_s3, 256, %s47_s25, [#allocation8], %s477_s7, %s477_s7, %s478_s8  }
  0x34   :  { %470 = dma.done.wait [#allocation5], 256  }
  0x35   :  { %471 = vsyncadd [#allocation5], 4294967040 }
  0x36   :  { %472 = dma.done.wait [#allocation8], 512  }
  0x37   :  { %473 = vsyncadd [#allocation8], 4294966784  ;;  %v483_v0 = vmov 0.0   ;;  %vm484_vm0 = vmmov 0   ;;  %v357_v1 = vld [vmem:[#allocation7] sm:$0xff]   ;;  %v358_v2 = vld [vmem:[#allocation7 + $0x8] sm:$0xff]  }
  0x38   :  { %331 = vmatprep.subr.bf16.mxu0 %v483_v0  ;;  %335 = vmatprep.mubr.msk.bf16.mxu0 %vm484_vm0, %v483_v0  ;;  %v69_v3 = vld [vmem:[#allocation4] sm:$0xff]  ;;  %v70_v4 = vld [vmem:[#allocation4 + $0x8] sm:$0xff]  ;;  %vm95_vm1 = vcmask 261120   ;;  %vm150_vm2 = vcmask 257024  }
  0x39   :  { %339 = vmatprep.subr.bf16.mxu1 %v483_v0  ;;  %343 = vmatprep.mubr.msk.bf16.mxu1 %vm484_vm0, %v483_v0  ;;  %v71_v5 = vpack.c.bf16 %v70_v4, %v69_v3  ;;  %v359_v6 = vld [vmem:[#allocation9] sm:$0xff]   ;;  %v360_v7 = vld [vmem:[#allocation9 + $0x8] sm:$0xff]  }
  0x3a   :  { %332 = vmatpush3.bf16.msra.mxu0 %v357_v1  ;;  %340 = vmatpush3.bf16.msra.mxu1 %v359_v6  ;;  %v312_v8 = vld [vmem:[%s594_s2] ss:$0 sm:$0xff] }
  0x3b   :  { %333 = vmatprep.subr.bf16.mxu0 %v483_v0  ;;  %341 = vmatprep.subr.bf16.mxu1 %v483_v0  ;;  %v318_v20 = vld [vmem:[%s596_s4] ss:$0 sm:$0xff]  ;;  %s485_s4 = smov [#allocation10]  }
  0x3c   :  { %s295_s15 = sshll.u32 %s485_s4, 4  ;;  %s296_s15 = int_to_ptr.vmem [resolvable:$true] %s295_s15 }
  0x3d   :  { %s448_s16 = scalar_lea.vmem %s296_s15, 128  ;;  %p453_p11 = scmp.lt.s32.totalorder %s296_s15, %s296_s15 }
  0x3e   :  { %334 = vmatpush3.bf16.msra.mxu0 %v358_v2  ;;  %342 = vmatpush3.bf16.msra.mxu1 %v360_v7  ;;  %p449_p10 = scmp.ne.s32.totalorder %s296_s15, %s448_s16  ;;  %p454_p12 = scmp.lt.s32.totalorder %s448_s16, %s448_s16 }
  0x40   :  { %p455_p13 = por %p454_p12, %p453_p11 }
  0x41   :  { %336 = vmatmul.mubr.msk.bf16.vlgmr.msra.gmra.mrb[0].mxu0 %vm95_vm1, %v71_v5 }
  0x42   :  { %p456_p0 = pnand %p455_p13, %p449_p10 }
 0x114   :  { %v133_v9 = vpop.f32.mrb[0].mxu0 }
 0x115   :  { %v134_v10 = vadd.f32 %v312_v8, %v133_v9  ;;  %v337_v11 = vpop.f32.mrb[1].mxu0 }
 0x116   :  { %v136_v12 = vpop.f32.mrb[2].mxu0 }
 0x117   :  { %362 = vtanh.f32 %v134_v10  ;;  %v137_v13 = vadd.f32 %v312_v8, %v136_v12  ;;  %v338_v14 = vpop.f32.mrb[3].mxu0 }
 0x119   :  { %364 = vtanh.f32 %v137_v13 }
 0x121   :  { %v363_v15 = vpop.eup %362 }
 0x122   :  { %v323_v16 = vpack.c.bf16 %v363_v15, %v363_v15 }
 0x123   :  { %v365_v17 = vpop.eup %364 }
 0x124   :  { %151 = vst.msk [vmem:[#allocation10] sm:$0xf] %vm150_vm2, %v323_v16  ;;  %v324_v18 = vpack.c.bf16 %v365_v17, %v365_v17 }
 0x126   :  { %152 = vst.msk [vmem:[#allocation10 + $0x4] sm:$0xf] %vm150_vm2, %v324_v18 }
 0x12d   :  { %v361_v19 = vld [vmem:[#allocation10] sm:$0xff]  }
 0x12e   :  { %344 = vmatmul.mubr.msk.bf16.vlgmr.msra.gmra.mrb[0].mxu1 %vm95_vm1, %v361_v19 }
 0x201   :  { %v225_v21 = vpop.f32.mrb[0].mxu1 }
 0x202   :  { %v226_v22 = vadd.f32 %v318_v20, %v225_v21  ;;  %v345_v23 = vpop.f32.mrb[1].mxu1 }
 0x203   :  { %v228_v24 = vpop.f32.mrb[2].mxu1 }
 0x204   :  { %v234_v25 = vmax.f32 %v226_v22, -1e+30  ;;  %v229_v26 = vadd.f32 %v318_v20, %v228_v24  ;;  %v346_v27 = vpop.f32.mrb[3].mxu1 }
 0x206   :  { %263 = vmax.xlane.f32.xlu0 %v234_v25  ;;  %v235_v28 = vmax.f32 %v229_v26, -1e+30  ;;  %v242_v29 = vsub.f32 -1e+30, %v234_v25  ;;  %v236_v32 = vsub.f32 %v226_v22, %v234_v25 }
 0x208   :  { %v244_v30 = vmul.f32 1.442695, %v242_v29  ;;  %v243_v31 = vsub.f32 -1e+30, %v235_v28  ;;  %v238_v34 = vmul.f32 1.442695, %v236_v32  ;;  %v237_v35 = vsub.f32 %v229_v26, %v235_v28 }
 0x20a   :  { %265 = vmax.xlane.f32.xlu0 %v235_v28  ;;  %366 = vpow2.f32 %v244_v30  ;;  %v246_v33 = vmul.f32 1.442695, %v243_v31  ;;  %v240_v38 = vmul.f32 1.442695, %v237_v35 }
 0x20c   :  { %368 = vpow2.f32 %v246_v33 }
 0x20d   :  { %370 = vpow2.f32 %v238_v34 }
 0x214   :  { %v367_v42 = vpop.eup %366 }
 0x215   :  { %v250_v44 = vmul.f32 0.0, %v367_v42 }
 0x216   :  { %v369_v45 = vpop.eup %368 }
 0x217   :  { %v371_v46 = vpop.eup %370  ;;  %v251_v48 = vmul.f32 0.0, %v369_v45 }
 0x218   :  { %v252_v47 = vadd.f32 %v371_v46, %v250_v44 }
 0x293   :  { %v264_v36 = vpop.xlane.xlu0 %263 }
 0x294   :  { %v269_v37 = vsub.f32 %v234_v25, %v264_v36 }
 0x296   :  { %v271_v39 = vmul.f32 1.442695, %v269_v37 }
 0x297   :  { %v266_v40 = vpop.xlane.xlu0 %265 }
 0x298   :  { %372 = vpow2.f32 %v271_v39  ;;  %v270_v41 = vsub.f32 %v235_v28, %v266_v40 }
 0x299   :  { %374 = vpow2.f32 %v240_v38 }
 0x29a   :  { %v273_v43 = vmul.f32 1.442695, %v270_v41 }
 0x29c   :  { %376 = vpow2.f32 %v273_v43 }
 0x2a2   :  { %v373_v49 = vpop.eup %372 }
 0x2a3   :  { %v275_v50 = vmul.f32 %v373_v49, %v252_v47  ;;  %v375_v51 = vpop.eup %374 }
 0x2a4   :  { %v253_v52 = vadd.f32 %v375_v51, %v251_v48 }
 0x2a5   :  { %277 = vadd.xlane.f32.xlu1 %v275_v50 }
 0x2a6   :  { %v377_v53 = vpop.eup %376 }
 0x2a7   :  { %v276_v54 = vmul.f32 %v377_v53, %v253_v52 }
 0x2a9   :  { %279 = vadd.xlane.f32.xlu1 %v276_v54 }
 0x2aa   :  { %459 = shalt.err (!%p456_p0)
}
 0x2ab   :  { %s460_s19 = scalar_lea.hbm %s597_s5, 128 }
 0x2ac   :  { %p461_p1 = scmp.ne.s32.totalorder %s597_s5, %s460_s19  ;;  %p464_p2 = scmp.lt.u32.totalorder %s460_s19, %s597_s5 }
 0x2ae   :  { %p466_p3 = pnand %p464_p2, %p461_p1 }
 0x2b0   :  { %469 = shalt.err (!%p466_p3)
}
 0x2b1   :  { %301 = dma.vmem_to_hbm [thread:$0]  %s296_s15, 128, %s597_s5, [#allocation6], %s477_s7, %s477_s7, %s478_s8   ;;  %vm287_vm3 = vcmask 7168  }
 0x332   :  { %v278_v55 = vpop.xlane.xlu1 %277 }
 0x333   :  { %378 = vlog2.f32 %v278_v55 }
 0x336   :  { %v280_v56 = vpop.xlane.xlu1 %279 }
 0x337   :  { %380 = vlog2.f32 %v280_v56 }
 0x33d   :  { %v379_v57 = vpop.eup %378 }
 0x33e   :  { %v282_v58 = vmul.f32 0.6931472, %v379_v57 }
 0x340   :  { %v285_v59 = vadd.f32 %v282_v58, %v264_v36 }
 0x341   :  { %v381_v60 = vpop.eup %380 }
 0x342   :  { %288 = vst.msk [vmem:[%s598_s6] sm:$0xff] %vm287_vm3, %v285_v59  ;;  %v284_v61 = vmul.f32 0.6931472, %v381_v60 }
 0x344   :  { %v286_v62 = vadd.f32 %v284_v61, %v266_v40 }
 0x346   :  { %289 = vst.msk [vmem:[%s598_s6 + $0x8] sm:$0xff] %vm287_vm3, %v286_v62 }
 0x347   :  { %474 = dma.done.wait [#allocation6], 128  }
 0x348   :  { %475 = vsyncadd [#allocation6], 4294967168 }
 0x349   :  { %309 = vsyncpa [#allocation5], 1 }
 0x34a   :  { %310 = vsyncpa [#allocation8], 1 }
 0x34b   :  { %311 = vsyncpa [#allocation6], 1 }

</bundles_post_ra>
